<compile_context>
chip_gen: v6e
topology: v6e:2x2x1
jax: 0.10.0
libtpu: 0.0.40
codegen_flags: <defaults>
</compile_context>

<pallas_src>
import functools

import jax
import jax.numpy as jnp
from jax import lax
from jax.experimental import pallas as pl
from jax.experimental.pallas import tpu as pltpu


def _rankloss_kernel(ii_ref, jj_ref,              # SMEM: upper-triangle tile pairs
                     pi_ref, ti_ref,              # [B, T] i-tile of p / t
                     pj_ref, tj_ref,              # [B, T] j-tile of p / t
                     mse_ref, rank_ref,           # [1, 1, 1] per-step partials
                     *, n_true, tile, needs_mask):
    s = pl.program_id(0)
    it = ii_ref[s]
    jt = jj_ref[s]
    is_diag = it == jt

    pi = pi_ref[...].astype(jnp.float32)          # [B, T], lanes index the i tile
    ti = ti_ref[...].astype(jnp.float32)
    pj = pj_ref[...].astype(jnp.float32)          # [B, T], lanes index the j tile
    tj = tj_ref[...].astype(jnp.float32)

    # Sublane-major copy of the i tile, built once per grid step (not per batch
    # element): pi_t[b] is already a [T, 1] column vector.
    pi_t = pi[:, :, None]                         # [B, T, 1]
    ti_t = ti[:, :, None]

    if needs_mask:
        # Zero out pairs that touch padded (>= n_true) columns.
        col_i = it * tile + lax.broadcasted_iota(jnp.int32, (tile, 1), 0)
        col_j = jt * tile + lax.broadcasted_iota(jnp.int32, (1, tile), 1)
        valid = jnp.logical_and(col_i < n_true, col_j < n_true)    # [T, T]

    bsz = pi.shape[0]
    acc = jnp.zeros((tile, 1), jnp.float32)
    for b in range(bsz):                          # small static batch: unrolled
        pd = pi_t[b] - pj[b:b + 1, :]             # [T, 1] - [1, T] -> [T, T]
        td = ti_t[b] - tj[b:b + 1, :]
        neg = jnp.minimum(pd * td, 0.0)           # == -relu(-(pd * td))
        if needs_mask:
            neg = jnp.where(valid, neg, 0.0)
        # Lane-reduce (XLU) right away; only a [T, 1] running value stays live.
        acc = acc + jnp.sum(neg, axis=-1, keepdims=True)

    # Off-diagonal tiles stand in for their mirror image as well (symmetry).
    w = jnp.where(is_diag, jnp.float32(1.0), jnp.float32(2.0))
    rank_ref[...] = jnp.reshape(w * jnp.sum(acc), (1, 1, 1))

    # Fused MSE partial: every column tile is a diagonal tile exactly once.
    # Zero padding keeps (p - t)^2 == 0 on padded columns -> no mask needed.
    d = pi - ti
    mse_ref[...] = jnp.reshape(
        jnp.where(is_diag, jnp.sum(d * d), jnp.float32(0.0)), (1, 1, 1))


def _pick_tile(n_pad: int, max_tile: int) -> int:
    """Largest lane-aligned tile (multiple of 128, <= max_tile) dividing n_pad."""
    max_tile = max(128, (max_tile // 128) * 128)
    if n_pad <= max_tile:
        return n_pad
    for t in range(max_tile, 127, -128):
        if n_pad % t == 0:
            return t
    return 128   # unreachable: n_pad is always a multiple of 128


def rank_loss(r_pred, r_true, alpha: float = 1.0, max_tile: int = 512):
    """Pallas equivalent of RankLoss.forward. Inputs: [B, N] (extra size-1 dims ok)."""
    p = jnp.squeeze(r_pred)
    t = jnp.squeeze(r_true)
    if p.ndim == 1:
        # torch .squeeze() collapses B == 1 (or N == 1) to 1-D; treat as one batch.
        p = p[None, :]
        t = t[None, :]
    if p.ndim != 2 or p.shape != t.shape:
        raise ValueError(f"expected matching [B, N] inputs, got {p.shape} vs {t.shape}")
    if not jnp.issubdtype(p.dtype, jnp.floating):
        p = p.astype(jnp.float32)
    if not jnp.issubdtype(t.dtype, jnp.floating):
        t = t.astype(jnp.float32)

    B, N = p.shape
    n_pad = ((N + 127) // 128) * 128
    needs_mask = n_pad != N
    if needs_mask:
        # Zero padding: MSE pads cancel exactly; the rank term is masked in-kernel.
        p = jnp.pad(p, ((0, 0), (0, n_pad - N)))
        t = jnp.pad(t, ((0, 0), (0, n_pad - N)))

    T = _pick_tile(n_pad, max_tile)
    n_t = n_pad // T

    # Flattened upper-triangle tile-pair list (it <= jt), scalar-prefetched.
    pairs = [(i, j) for i in range(n_t) for j in range(i, n_t)]
    S = len(pairs)
    ii = jnp.asarray([i for i, _ in pairs], dtype=jnp.int32)
    jj = jnp.asarray([j for _, j in pairs], dtype=jnp.int32)

    # Tight, honest VMEM budget: a few live [T, T] f32 values (no [B, T, T]
    # temporaries any more) + double-buffered input/output blocks.
    tmp_bytes = 6 * T * T * 4
    in_bytes = 4 * 2 * B * T * 4
    out_bytes = 2 * 2 * 8 * 128 * 4
    vmem_limit = int(min(max(2 * (tmp_bytes + in_bytes + out_bytes), 4 * 2**20),
                         32 * 2**20))

    kernel = functools.partial(_rankloss_kernel, n_true=N, tile=T,
                               needs_mask=needs_mask)

    grid_spec = pltpu.PrefetchScalarGridSpec(
        num_scalar_prefetch=2,
        grid=(S,),
        in_specs=[
            pl.BlockSpec((B, T), lambda s, ii, jj: (0, ii[s])),    # p, i tile
            pl.BlockSpec((B, T), lambda s, ii, jj: (0, ii[s])),    # t, i tile
            pl.BlockSpec((B, T), lambda s, ii, jj: (0, jj[s])),    # p, j tile
            pl.BlockSpec((B, T), lambda s, ii, jj: (0, jj[s])),    # t, j tile
        ],
        out_specs=[
            pl.BlockSpec((1, 1, 1), lambda s, ii, jj: (s, 0, 0)),  # mse partial
            pl.BlockSpec((1, 1, 1), lambda s, ii, jj: (s, 0, 0)),  # rank partial
        ],
    )

    mse_partials, rank_partials = pl.pallas_call(
        kernel,
        out_shape=(
            jax.ShapeDtypeStruct((S, 1, 1), jnp.float32),
            jax.ShapeDtypeStruct((S, 1, 1), jnp.float32),
        ),
        grid_spec=grid_spec,
        compiler_params=pltpu.CompilerParams(
            dimension_semantics=("parallel",),   # uniform steps -> balanced on v7x
            vmem_limit_bytes=vmem_limit,
        ),
    )(ii, jj, p, t, p, t)

    mse = jnp.sum(mse_partials) / (B * N)
    # relu(-(x)) == -min(x, 0): single negate on the reduced scalar.
    rank = -jnp.sum(rank_partials) / (B * N * N)
    return mse + jnp.float32(alpha) * rank


def _rank_loss_ref(r_pred, r_true, alpha: float = 1.0):
    """Pure-JAX reference mirroring the PyTorch module."""
    p = jnp.squeeze(r_pred).astype(jnp.float32)
    t = jnp.squeeze(r_true).astype(jnp.float32)
    if p.ndim == 1:
        p = p[None, :]
        t = t[None, :]
    mse = jnp.mean((p - t) ** 2)
    pd = p[:, :, None] - p[:, None, :]
    td = t[:, :, None] - t[:, None, :]
    rank = jnp.mean(jnp.maximum(-(pd * td), 0.0))
    return mse + alpha * rank


if __name__ == "__main__":
    key = jax.random.PRNGKey(0)
    ks = jax.random.split(key, 6)

    # Small shape implied by the module: [B, N] rankings (padded + masked path).
    B, N = 2, 8
    r_pred = jax.random.normal(ks[0], (B, N), dtype=jnp.float32)
    r_true = jax.random.normal(ks[1], (B, N), dtype=jnp.float32)
    loss = rank_loss(r_pred, r_true, alpha=1.0)
    jax.block_until_ready(loss)
    ref = _rank_loss_ref(r_pred, r_true, alpha=1.0)
    assert jnp.allclose(loss, ref, rtol=1e-5, atol=1e-6), (loss, ref)

    # Multi-tile upper-triangle grid with the larger T=512 tile (no masking).
    p2 = jax.random.normal(ks[2], (2, 1024), dtype=jnp.float32)
    t2 = jax.random.normal(ks[3], (2, 1024), dtype=jnp.float32)
    loss2 = rank_loss(p2, t2, alpha=0.5)
    jax.block_until_ready(loss2)
    ref2 = _rank_loss_ref(p2, t2, alpha=0.5)
    assert jnp.allclose(loss2, ref2, rtol=5e-4, atol=1e-6), (loss2, ref2)

    # Ragged N (700 pads to 768, T=384) with odd batch: masked multi-tile path.
    p3 = jax.random.normal(ks[4], (3, 700), dtype=jnp.float32)
    t3 = jax.random.normal(ks[5], (3, 700), dtype=jnp.float32)
    loss3 = rank_loss(p3, t3, alpha=2.0)
    jax.block_until_ready(loss3)
    ref3 = _rank_loss_ref(p3, t3, alpha=2.0)
    assert jnp.allclose(loss3, ref3, rtol=5e-4, atol=1e-6), (loss3, ref3)

    print("KERNEL_OK")
</pallas_src>

<mosaic_0001>
module attributes {stable_mosaic.version = 11 : i64} {
  func.func @_rankloss_kernel(%arg0: i32, %arg1: memref<1xi32, #tpu.memory_space<smem>>, %arg2: memref<1xi32, #tpu.memory_space<smem>>, %arg3: memref<2x128xf32, #tpu.memory_space<vmem>>, %arg4: memref<2x128xf32, #tpu.memory_space<vmem>>, %arg5: memref<2x128xf32, #tpu.memory_space<vmem>>, %arg6: memref<2x128xf32, #tpu.memory_space<vmem>>, %arg7: memref<1x1x1xf32, #tpu.memory_space<vmem>>, %arg8: memref<1x1x1xf32, #tpu.memory_space<vmem>>) attributes {dimension_semantics = [#tpu.dimension_semantics<parallel>], iteration_bounds = array<i64: 1>, scalar_prefetch = 2 : i64, scratch_operands = 0 : i64, tpu.core_type = #tpu.core_type<tc>, window_params = [{transform_indices = @transform_0, window_bounds = array<i64: 2, 128>}, {transform_indices = @transform_1, window_bounds = array<i64: 2, 128>}, {transform_indices = @transform_2, window_bounds = array<i64: 2, 128>}, {transform_indices = @transform_3, window_bounds = array<i64: 2, 128>}, {transform_indices = @transform_4, window_bounds = array<i64: 1, 1, 1>}, {transform_indices = @transform_5, window_bounds = array<i64: 1, 1, 1>}]} {
    %0 = arith.index_cast %arg0 : i32 to index
    %1 = memref.load %arg1[%0] : memref<1xi32, #tpu.memory_space<smem>>
    %2 = arith.index_cast %arg0 : i32 to index
    %3 = memref.load %arg2[%2] : memref<1xi32, #tpu.memory_space<smem>>
    %4 = arith.cmpi eq, %1, %3 : i32
    %c0 = arith.constant 0 : index
    %c0_0 = arith.constant 0 : index
    %5 = vector.load %arg3[%c0, %c0_0] : memref<2x128xf32, #tpu.memory_space<vmem>>, vector<2x128xf32>
    %c0_1 = arith.constant 0 : index
    %c0_2 = arith.constant 0 : index
    %6 = vector.load %arg4[%c0_1, %c0_2] : memref<2x128xf32, #tpu.memory_space<vmem>>, vector<2x128xf32>
    %c0_3 = arith.constant 0 : index
    %c0_4 = arith.constant 0 : index
    %7 = vector.load %arg5[%c0_3, %c0_4] : memref<2x128xf32, #tpu.memory_space<vmem>>, vector<2x128xf32>
    %c0_5 = arith.constant 0 : index
    %c0_6 = arith.constant 0 : index
    %8 = vector.load %arg6[%c0_5, %c0_6] : memref<2x128xf32, #tpu.memory_space<vmem>>, vector<2x128xf32>
    %9 = vector.shape_cast %5 : vector<2x128xf32> to vector<2x128x1xf32>
    %10 = vector.shape_cast %6 : vector<2x128xf32> to vector<2x128x1xf32>
    %c128_i32 = arith.constant 128 : i32
    %11 = arith.muli %1, %c128_i32 : i32
    %12 = tpu.iota {dimensions = array<i32: 0>} : vector<128x1xi32>
    %13 = vector.broadcast %11 : i32 to vector<128x1xi32>
    %14 = arith.addi %13, %12 : vector<128x1xi32>
    %c128_i32_7 = arith.constant 128 : i32
    %15 = arith.muli %3, %c128_i32_7 : i32
    %16 = tpu.iota {dimensions = array<i32: 1>} : vector<1x128xi32>
    %17 = vector.broadcast %15 : i32 to vector<1x128xi32>
    %18 = arith.addi %17, %16 : vector<1x128xi32>
    %c8_i32 = arith.constant 8 : i32
    %19 = vector.broadcast %c8_i32 : i32 to vector<128x1xi32>
    %20 = arith.cmpi slt, %14, %19 : vector<128x1xi32>
    %c8_i32_8 = arith.constant 8 : i32
    %21 = vector.broadcast %c8_i32_8 : i32 to vector<1x128xi32>
    %22 = arith.cmpi slt, %18, %21 : vector<1x128xi32>
    %23 = vector.broadcast %20 : vector<128x1xi1> to vector<128x128xi1>
    %24 = vector.broadcast %22 : vector<1x128xi1> to vector<128x128xi1>
    %25 = arith.andi %23, %24 : vector<128x128xi1>
    %cst = arith.constant 0.000000e+00 : f32
    %26 = vector.broadcast %cst : f32 to vector<128x1xf32>
    %27 = vector.extract_strided_slice %9 {offsets = [0, 0, 0], sizes = [1, 128, 1], strides = [1, 1, 1]} : vector<2x128x1xf32> to vector<1x128x1xf32>
    %28 = vector.shape_cast %27 : vector<1x128x1xf32> to vector<128x1xf32>
    %29 = vector.extract_strided_slice %7 {offsets = [0, 0], sizes = [1, 128], strides = [1, 1]} : vector<2x128xf32> to vector<1x128xf32>
    %30 = vector.broadcast %28 : vector<128x1xf32> to vector<128x128xf32>
    %31 = vector.broadcast %29 : vector<1x128xf32> to vector<128x128xf32>
    %32 = arith.subf %30, %31 : vector<128x128xf32>
    %33 = vector.extract_strided_slice %10 {offsets = [0, 0, 0], sizes = [1, 128, 1], strides = [1, 1, 1]} : vector<2x128x1xf32> to vector<1x128x1xf32>
    %34 = vector.shape_cast %33 : vector<1x128x1xf32> to vector<128x1xf32>
    %35 = vector.extract_strided_slice %8 {offsets = [0, 0], sizes = [1, 128], strides = [1, 1]} : vector<2x128xf32> to vector<1x128xf32>
    %36 = vector.broadcast %34 : vector<128x1xf32> to vector<128x128xf32>
    %37 = vector.broadcast %35 : vector<1x128xf32> to vector<128x128xf32>
    %38 = arith.subf %36, %37 : vector<128x128xf32>
    %39 = arith.mulf %32, %38 : vector<128x128xf32>
    %cst_9 = arith.constant 0.000000e+00 : f32
    %40 = vector.broadcast %cst_9 : f32 to vector<128x128xf32>
    %41 = arith.minimumf %39, %40 : vector<128x128xf32>
    %cst_10 = arith.constant 0.000000e+00 : f32
    %42 = vector.broadcast %cst_10 : f32 to vector<128x128xf32>
    %43 = arith.select %25, %41, %42 : vector<128x128xi1>, vector<128x128xf32>
    %cst_11 = arith.constant dense<0.000000e+00> : vector<128xf32>
    %44 = vector.multi_reduction <add>, %43, %cst_11 [1] : vector<128x128xf32> to vector<128xf32>
    %45 = vector.shape_cast %44 : vector<128xf32> to vector<128x1xf32>
    %46 = arith.addf %26, %45 : vector<128x1xf32>
    %47 = vector.extract_strided_slice %9 {offsets = [1, 0, 0], sizes = [1, 128, 1], strides = [1, 1, 1]} : vector<2x128x1xf32> to vector<1x128x1xf32>
    %48 = vector.shape_cast %47 : vector<1x128x1xf32> to vector<128x1xf32>
    %49 = vector.extract_strided_slice %7 {offsets = [1, 0], sizes = [1, 128], strides = [1, 1]} : vector<2x128xf32> to vector<1x128xf32>
    %50 = vector.broadcast %48 : vector<128x1xf32> to vector<128x128xf32>
    %51 = vector.broadcast %49 : vector<1x128xf32> to vector<128x128xf32>
    %52 = arith.subf %50, %51 : vector<128x128xf32>
    %53 = vector.extract_strided_slice %10 {offsets = [1, 0, 0], sizes = [1, 128, 1], strides = [1, 1, 1]} : vector<2x128x1xf32> to vector<1x128x1xf32>
    %54 = vector.shape_cast %53 : vector<1x128x1xf32> to vector<128x1xf32>
    %55 = vector.extract_strided_slice %8 {offsets = [1, 0], sizes = [1, 128], strides = [1, 1]} : vector<2x128xf32> to vector<1x128xf32>
    %56 = vector.broadcast %54 : vector<128x1xf32> to vector<128x128xf32>
    %57 = vector.broadcast %55 : vector<1x128xf32> to vector<128x128xf32>
    %58 = arith.subf %56, %57 : vector<128x128xf32>
    %59 = arith.mulf %52, %58 : vector<128x128xf32>
    %cst_12 = arith.constant 0.000000e+00 : f32
    %60 = vector.broadcast %cst_12 : f32 to vector<128x128xf32>
    %61 = arith.minimumf %59, %60 : vector<128x128xf32>
    %cst_13 = arith.constant 0.000000e+00 : f32
    %62 = vector.broadcast %cst_13 : f32 to vector<128x128xf32>
    %63 = arith.select %25, %61, %62 : vector<128x128xi1>, vector<128x128xf32>
    %cst_14 = arith.constant dense<0.000000e+00> : vector<128xf32>
    %64 = vector.multi_reduction <add>, %63, %cst_14 [1] : vector<128x128xf32> to vector<128xf32>
    %65 = vector.shape_cast %64 : vector<128xf32> to vector<128x1xf32>
    %66 = arith.addf %46, %65 : vector<128x1xf32>
    %cst_15 = arith.constant 1.000000e+00 : f32
    %cst_16 = arith.constant 2.000000e+00 : f32
    %67 = arith.select %4, %cst_15, %cst_16 : f32
    %68 = vector.shape_cast %66 : vector<128x1xf32> to vector<1x128x1xf32>
    %cst_17 = arith.constant dense<0.000000e+00> : vector<1xf32>
    %69 = vector.multi_reduction <add>, %68, %cst_17 [1, 2] : vector<1x128x1xf32> to vector<1xf32>
    %70 = vector.shape_cast %69 : vector<1xf32> to vector<1x1x1xf32>
    %71 = vector.extract %70[0, 0, 0] : f32 from vector<1x1x1xf32>
    %72 = arith.mulf %67, %71 : f32
    %73 = vector.broadcast %72 : f32 to vector<1x1x1xf32>
    %c0_18 = arith.constant 0 : index
    %c0_19 = arith.constant 0 : index
    %c0_20 = arith.constant 0 : index
    %74 = vector.load %arg8[%c0_18, %c0_19, %c0_20] : memref<1x1x1xf32, #tpu.memory_space<vmem>>, vector<1x1x1xf32>
    tpu.vector_store %arg8[%c0_18, %c0_19, %c0_20], %73 {strides = array<i32>} : memref<1x1x1xf32, #tpu.memory_space<vmem>>, vector<1x1x1xf32>,
    %75 = arith.subf %5, %6 : vector<2x128xf32>
    %76 = arith.mulf %75, %75 : vector<2x128xf32>
    %77 = vector.shape_cast %76 : vector<2x128xf32> to vector<1x2x128xf32>
    %cst_21 = arith.constant dense<0.000000e+00> : vector<1xf32>
    %78 = vector.multi_reduction <add>, %77, %cst_21 [1, 2] : vector<1x2x128xf32> to vector<1xf32>
    %79 = vector.shape_cast %78 : vector<1xf32> to vector<1x1x1xf32>
    %80 = vector.extract %79[0, 0, 0] : f32 from vector<1x1x1xf32>
    %cst_22 = arith.constant 0.000000e+00 : f32
    %81 = arith.select %4, %80, %cst_22 : f32
    %82 = vector.broadcast %81 : f32 to vector<1x1x1xf32>
    %c0_23 = arith.constant 0 : index
    %c0_24 = arith.constant 0 : index
    %c0_25 = arith.constant 0 : index
    %83 = vector.load %arg7[%c0_23, %c0_24, %c0_25] : memref<1x1x1xf32, #tpu.memory_space<vmem>>, vector<1x1x1xf32>
    tpu.vector_store %arg7[%c0_23, %c0_24, %c0_25], %82 {strides = array<i32>} : memref<1x1x1xf32, #tpu.memory_space<vmem>>, vector<1x1x1xf32>,
    return
  }
  func.func @transform_0(%arg0: i32, %arg1: memref<1xi32, #tpu.memory_space<smem>>, %arg2: memref<1xi32, #tpu.memory_space<smem>>) -> (i32, i32) {
    %0 = arith.index_cast %arg0 : i32 to index
    %1 = memref.load %arg1[%0] : memref<1xi32, #tpu.memory_space<smem>>
    %c0_i32 = arith.constant 0 : i32
    %c0_i32_0 = arith.constant 0 : i32
    return %c0_i32, %1 : i32, i32
  }
  func.func @transform_1(%arg0: i32, %arg1: memref<1xi32, #tpu.memory_space<smem>>, %arg2: memref<1xi32, #tpu.memory_space<smem>>) -> (i32, i32) {
    %0 = arith.index_cast %arg0 : i32 to index
    %1 = memref.load %arg1[%0] : memref<1xi32, #tpu.memory_space<smem>>
    %c0_i32 = arith.constant 0 : i32
    %c0_i32_0 = arith.constant 0 : i32
    return %c0_i32, %1 : i32, i32
  }
  func.func @transform_2(%arg0: i32, %arg1: memref<1xi32, #tpu.memory_space<smem>>, %arg2: memref<1xi32, #tpu.memory_space<smem>>) -> (i32, i32) {
    %0 = arith.index_cast %arg0 : i32 to index
    %1 = memref.load %arg2[%0] : memref<1xi32, #tpu.memory_space<smem>>
    %c0_i32 = arith.constant 0 : i32
    %c0_i32_0 = arith.constant 0 : i32
    return %c0_i32, %1 : i32, i32
  }
  func.func @transform_3(%arg0: i32, %arg1: memref<1xi32, #tpu.memory_space<smem>>, %arg2: memref<1xi32, #tpu.memory_space<smem>>) -> (i32, i32) {
    %0 = arith.index_cast %arg0 : i32 to index
    %1 = memref.load %arg2[%0] : memref<1xi32, #tpu.memory_space<smem>>
    %c0_i32 = arith.constant 0 : i32
    %c0_i32_0 = arith.constant 0 : i32
    return %c0_i32, %1 : i32, i32
  }
  func.func @transform_4(%arg0: i32, %arg1: memref<1xi32, #tpu.memory_space<smem>>, %arg2: memref<1xi32, #tpu.memory_space<smem>>) -> (i32, i32, i32) {
    %c0_i32 = arith.constant 0 : i32
    %c0_i32_0 = arith.constant 0 : i32
    %c0_i32_1 = arith.constant 0 : i32
    return %arg0, %c0_i32, %c0_i32_0 : i32, i32, i32
  }
  func.func @transform_5(%arg0: i32, %arg1: memref<1xi32, #tpu.memory_space<smem>>, %arg2: memref<1xi32, #tpu.memory_space<smem>>) -> (i32, i32, i32) {
    %c0_i32 = arith.constant 0 : i32
    %c0_i32_0 = arith.constant 0 : i32
    %c0_i32_1 = arith.constant 0 : i32
    return %arg0, %c0_i32, %c0_i32_0 : i32, i32, i32
  }
}

</mosaic_0001>

<bundles_post_ra>
// kernel: tpu_custom_call.1
= control target key start
LH: loop header
LB: loop body
LE: loop exit
PB: predicated region body
PF: predicated region fallthrough
CT: control target
= control target key end

     0   :  { %15 = vsyncpa [#allocation6], 0  ;;  %v100_v0 = vlaneseq  ;;  %s1353_s0 = inlined_call_operand.<no memory space> [shape: s32[1], index: 0, kind: input, shape index: {}]   ;;  %s1354_s1 = inlined_call_operand.<no memory space> [shape: s32[1], index: 1, kind: input, shape index: {}]   ;;  %s1355_s2 = inlined_call_operand.vmem [shape: f32[2,128], index: 2, kind: input, shape index: {}]   ;;  %s1356_s3 = inlined_call_operand.vmem [shape: f32[2,128], index: 3, kind: input, shape index: {}]   ;;  %s1357_s4 = inlined_call_operand.vmem [shape: f32[2,128], index: 4, kind: input, shape index: {}]   ;;  %s1358_s5 = inlined_call_operand.vmem [shape: f32[2,128], index: 5, kind: input, shape index: {}]   ;;  %s1359_s6 = inlined_call_operand.hbm [shape: f32[1,1,1], index: 6, kind: output, shape index: {0}]   ;;  %s1360_s7 = inlined_call_operand.hbm [shape: f32[1,1,1], index: 7, kind: output, shape index: {1}]  }
   0x1   :  { %p70_p0 = scmp.lt.s32.totalorder %s1353_s0, 0 }
   0x2   :  { %16 = vsyncpa [#allocation8], 0  ;;  %v966_v1 = vshrl.u32 %v100_v0, 7  ;;  %p82_p1 = scmp.lt.s32.totalorder %s1354_s1, 0  ;;  %v405_v28 = vand.u32 127, %v100_v0  ;;  %p95_p2 = scmp.eq.s32.totalorder %s1353_s0, %s1354_s1 }
   0x3   :  { %s71_s28 = scalar_select %p70_p0, %s1353_s0, 0 }
   0x4   :  { %v969_v2 = vsub.s32 1, %v966_v1  ;;  %v972_v3 = vsub.s32 0, %v966_v1  ;;  %s83_s15 = scalar_select %p82_p1, %s1354_s1, 0  ;;  %v371_v35 = vadd.s32 8, %v966_v1  ;;  %v372_v48 = vadd.s32 16, %v966_v1 }
   0x5   :  { %s861_s29 = sshll.u32 %s71_s28, 1  ;;  %v373_v61 = vadd.s32 24, %v966_v1  ;;  %s918_s11 = smov [#allocation5]  }
   0x6   :  { %s73_s9 = scalar_lea.vmem %s1355_s2, %s861_s29  ;;  %s79_s12 = scalar_lea.vmem %s1356_s3, %s861_s29 }
   0x7   :  { %v977_v4 = vld [vmem:[%s73_s9] sm:$0x3]  ;;  %s863_s16 = sshll.u32 %s83_s15, 1  ;;  %s917_s9 = smov [#allocation7]  }
   0x8   :  { %v981_v5 = vrot.slane %v977_v4, %v969_v2  ;;  %v985_v6 = vrot.slane %v977_v4, %v972_v3  ;;  %v992_v7 = vld [vmem:[%s79_s12] sm:$0x3]  ;;  %s91_s19 = scalar_lea.vmem %s1358_s5, %s863_s16  ;;  %s85_s22 = scalar_lea.vmem %s1357_s4, %s863_s16 }
   0x9   :  { %v998_v8 = vrot.slane %v992_v7, %v972_v3  ;;  %v1004_v9 = vrot.slane %v992_v7, %v969_v2  ;;  %v99_v22 = vld [vmem:[%s91_s19] sm:$0x3]  ;;  %s865_s5 = sshll.u32 %s1353_s0, 7  ;;  %s866_s4 = sshll.u32 %s1354_s1, 7 }
   0xa   :  { %172 = vbcast.lane.b32.xlu1 %v981_v5, 256  ;;  %105 = vbcast.lane.b32.xlu0 %v985_v6, 256  ;;  %v98_v23 = vld [vmem:[%s85_s22] sm:$0x3]  ;;  %v1083_v24 = vrot.slane %v99_v22, %v972_v3  ;;  %v1099_v29 = vstv %s865_s5  ;;  %v406_v30 = vstv %s866_s4  ;;  %v1103_v32 = vrot.slane %v99_v22, %v969_v2  ;;  %s747_s8 = scalar_select %p95_p2, 1.0, 2.0 }
   0xb   :  { %v1096_v27 = vrot.slane %v98_v23, %v972_v3  ;;  %v1109_v36 = vrot.slane %v98_v23, %v969_v2  ;;  %v387_v38 = vadd.s32 %v1099_v29, %v966_v1  ;;  %v1114_v39 = vadd.s32 %v406_v30, %v405_v28  ;;  %s825_s10 = sshll.u32 %s917_s9, 4  ;;  %s815_s12 = sshll.u32 %s918_s11, 4  ;;  %s826_s10 = int_to_ptr.vmem [resolvable:$true] %s825_s10  ;;  %s816_s12 = int_to_ptr.vmem [resolvable:$true] %s815_s12 }
   0xc   :  { %v388_v46 = vadd.s32 %v1099_v29, %v371_v35  ;;  %v389_v58 = vadd.s32 %v1099_v29, %v372_v48  ;;  %v375_v30 = vadd.s32 40, %v966_v1  ;;  %s873_s14 = scalar_lea.vmem %s826_s10, 16  ;;  %s877_s15 = scalar_lea.vmem %s826_s10, 32 }
   0xd   :  { %vm408_vm0 = vcmp.lt.s32.totalorder %v387_v38, 8  ;;  %vm424_vm1 = vcmp.lt.s32.totalorder %v1114_v39, 8  ;;  %p874_p3 = scmp.ne.s32.totalorder %s826_s10, %s873_s14  ;;  %p878_p4 = scmp.lt.s32.totalorder %s826_s10, %s826_s10 }
   0xe   :  { %176 = vbcast.lane.b32.xlu1 %v981_v5, 264  ;;  %109 = vbcast.lane.b32.xlu0 %v985_v6, 264  ;;  %vm1131_vm2 = vmand %vm408_vm0, %vm424_vm1  ;;  %vm409_vm3 = vcmp.lt.s32.totalorder %v388_v46, 8  ;;  %vm410_vm5 = vcmp.lt.s32.totalorder %v389_v58, 8  ;;  %p879_p5 = scmp.lt.s32.totalorder %s877_s15, %s873_s14 }
   0xf   :  { %vm1149_vm4 = vmand %vm409_vm3, %vm424_vm1 }
  0x10   :  { %vm1171_vm6 = vmand %vm410_vm5, %vm424_vm1  ;;  %p880_p6 = por %p879_p5, %p878_p4 }
  0x12   :  { %243 = vbcast.lane.b32.xlu1 %v998_v8, 264  ;;  %239 = vbcast.lane.b32.xlu0 %v998_v8, 256  ;;  %p881_p7 = pnand %p880_p6, %p874_p3 }
  0x16   :  { %310 = vbcast.lane.b32.xlu1 %v1004_v9, 264  ;;  %306 = vbcast.lane.b32.xlu0 %v1004_v9, 256 }
  0x1a   :  { %180 = vbcast.lane.b32.xlu1 %v981_v5, 272  ;;  %113 = vbcast.lane.b32.xlu0 %v985_v6, 272 }
  0x1e   :  { %314 = vbcast.lane.b32.xlu1 %v1004_v9, 272  ;;  %247 = vbcast.lane.b32.xlu0 %v998_v8, 272 }
  0x22   :  { %184 = vbcast.lane.b32.xlu1 %v981_v5, 280  ;;  %117 = vbcast.lane.b32.xlu0 %v985_v6, 280 }
  0x26   :  { %318 = vbcast.lane.b32.xlu1 %v1004_v9, 280  ;;  %251 = vbcast.lane.b32.xlu0 %v998_v8, 280 }
  0x2a   :  { %188 = vbcast.lane.b32.xlu1 %v981_v5, 288  ;;  %121 = vbcast.lane.b32.xlu0 %v985_v6, 288 }
  0x2e   :  { %322 = vbcast.lane.b32.xlu1 %v1004_v9, 288  ;;  %255 = vbcast.lane.b32.xlu0 %v998_v8, 288 }
  0x32   :  { %192 = vbcast.lane.b32.xlu1 %v981_v5, 296  ;;  %125 = vbcast.lane.b32.xlu0 %v985_v6, 296 }
  0x36   :  { %326 = vbcast.lane.b32.xlu1 %v1004_v9, 296  ;;  %259 = vbcast.lane.b32.xlu0 %v998_v8, 296 }
  0x3a   :  { %196 = vbcast.lane.b32.xlu1 %v981_v5, 304  ;;  %129 = vbcast.lane.b32.xlu0 %v985_v6, 304 }
  0x3e   :  { %330 = vbcast.lane.b32.xlu1 %v1004_v9, 304  ;;  %263 = vbcast.lane.b32.xlu0 %v998_v8, 304 }
  0x42   :  { %200 = vbcast.lane.b32.xlu1 %v981_v5, 312  ;;  %133 = vbcast.lane.b32.xlu0 %v985_v6, 312 }
  0x46   :  { %334 = vbcast.lane.b32.xlu1 %v1004_v9, 312  ;;  %267 = vbcast.lane.b32.xlu0 %v998_v8, 312 }
  0x4a   :  { %204 = vbcast.lane.b32.xlu1 %v981_v5, 320  ;;  %137 = vbcast.lane.b32.xlu0 %v985_v6, 320 }
  0x4e   :  { %338 = vbcast.lane.b32.xlu1 %v1004_v9, 320  ;;  %271 = vbcast.lane.b32.xlu0 %v998_v8, 320 }
  0x52   :  { %208 = vbcast.lane.b32.xlu1 %v981_v5, 328  ;;  %141 = vbcast.lane.b32.xlu0 %v985_v6, 328 }
  0x56   :  { %342 = vbcast.lane.b32.xlu1 %v1004_v9, 328  ;;  %275 = vbcast.lane.b32.xlu0 %v998_v8, 328 }
  0x5a   :  { %212 = vbcast.lane.b32.xlu1 %v981_v5, 336  ;;  %145 = vbcast.lane.b32.xlu0 %v985_v6, 336 }
  0x5e   :  { %346 = vbcast.lane.b32.xlu1 %v1004_v9, 336  ;;  %279 = vbcast.lane.b32.xlu0 %v998_v8, 336 }
  0x62   :  { %216 = vbcast.lane.b32.xlu1 %v981_v5, 344  ;;  %149 = vbcast.lane.b32.xlu0 %v985_v6, 344 }
  0x66   :  { %350 = vbcast.lane.b32.xlu1 %v1004_v9, 344  ;;  %283 = vbcast.lane.b32.xlu0 %v998_v8, 344 }
  0x6a   :  { %220 = vbcast.lane.b32.xlu1 %v981_v5, 352  ;;  %153 = vbcast.lane.b32.xlu0 %v985_v6, 352 }
  0x6e   :  { %354 = vbcast.lane.b32.xlu1 %v1004_v9, 352  ;;  %287 = vbcast.lane.b32.xlu0 %v998_v8, 352 }
  0x72   :  { %224 = vbcast.lane.b32.xlu1 %v981_v5, 360  ;;  %157 = vbcast.lane.b32.xlu0 %v985_v6, 360 }
  0x76   :  { %358 = vbcast.lane.b32.xlu1 %v1004_v9, 360  ;;  %291 = vbcast.lane.b32.xlu0 %v998_v8, 360 }
  0x7a   :  { %228 = vbcast.lane.b32.xlu1 %v981_v5, 368  ;;  %161 = vbcast.lane.b32.xlu0 %v985_v6, 368 }
  0x7c   :  { %v173_v10 = vpop.permute.xlu1 %172  ;;  %v106_v11 = vpop.permute.xlu0 %105 }
  0x7d   :  { %v479_v37 = vsub.f32 %v106_v11, %v1096_v27  ;;  %v615_v47 = vsub.f32 %v173_v10, %v1109_v36 }
  0x7e   :  { %362 = vbcast.lane.b32.xlu1 %v1004_v9, 368  ;;  %295 = vbcast.lane.b32.xlu0 %v998_v8, 368 }
  0x80   :  { %v1060_v12 = vpop.permute.xlu1 %176  ;;  %v110_v13 = vpop.permute.xlu0 %109 }
  0x81   :  { %v480_v45 = vsub.f32 %v110_v13, %v1096_v27  ;;  %v616_v57 = vsub.f32 %v1060_v12, %v1109_v36  ;;  %v390_v13 = vadd.s32 %v1099_v29, %v373_v61 }
  0x82   :  { %232 = vbcast.lane.b32.xlu1 %v981_v5, 376  ;;  %165 = vbcast.lane.b32.xlu0 %v985_v6, 376 }
  0x83   :  { %vm411_vm7 = vcmp.lt.s32.totalorder %v390_v13, 8 }
  0x84   :  { %v244_v14 = vpop.permute.xlu1 %243  ;;  %v240_v15 = vpop.permute.xlu0 %239  ;;  %vm1191_vm8 = vmand %vm411_vm7, %vm424_vm1 }
  0x85   :  { %v499_v31 = vsub.f32 %v240_v15, %v1083_v24  ;;  %v500_v40 = vsub.f32 %v244_v14, %v1083_v24  ;;  %v374_v14 = vadd.s32 32, %v966_v1 }
  0x86   :  { %366 = vbcast.lane.b32.xlu1 %v1004_v9, 376  ;;  %299 = vbcast.lane.b32.xlu0 %v998_v8, 376 }
  0x87   :  { %v515_v41 = vmul.f32 %v499_v31, %v479_v37  ;;  %v516_v49 = vmul.f32 %v500_v40, %v480_v45 }
  0x88   :  { %v311_v16 = vpop.permute.xlu1 %310  ;;  %v307_v17 = vpop.permute.xlu0 %306 }
  0x89   :  { %v635_v42 = vsub.f32 %v307_v17, %v1103_v32  ;;  %v636_v50 = vsub.f32 %v311_v16, %v1103_v32  ;;  %v531_v54 = vmin.f32 %v515_v41, 0.0  ;;  %v532_v60 = vmin.f32 %v516_v49, 0.0 }
  0x8a   :  { %v392_v49 = vadd.s32 %v1099_v29, %v375_v30 }
  0x8b   :  { %v651_v51 = vmul.f32 %v635_v42, %v615_v47  ;;  %v652_v62 = vmul.f32 %v636_v50, %v616_v57  ;;  %v547_v3 = vsel %vm1131_vm2, %v531_v54, 0.0 }
  0x8c   :  { %v1072_v18 = vpop.permute.xlu1 %180  ;;  %v114_v19 = vpop.permute.xlu0 %113  ;;  %vm413_vm11 = vcmp.lt.s32.totalorder %v392_v49, 8 }
  0x8d   :  { %v481_v59 = vsub.f32 %v114_v19, %v1096_v27  ;;  %v667_v5 = vmin.f32 %v651_v51, 0.0  ;;  %v617_v10 = vsub.f32 %v1072_v18, %v1109_v36  ;;  %v548_v18 = vsel %vm1149_vm4, %v532_v60, 0.0  ;;  %vm1221_vm12 = vmand %vm413_vm11, %vm424_vm1 }
  0x8e   :  { %v376_v51 = vadd.s32 48, %v966_v1 }
  0x8f   :  { %v683_v19 = vsel %vm1131_vm2, %v667_v5, 0.0 }
  0x90   :  { %v1080_v20 = vpop.permute.xlu1 %314  ;;  %v248_v21 = vpop.permute.xlu0 %247 }
  0x91   :  { %v501_v55 = vsub.f32 %v248_v21, %v1083_v24  ;;  %v637_v63 = vsub.f32 %v1080_v20, %v1103_v32  ;;  %v668_v20 = vmin.f32 %v652_v62, 0.0 }
  0x93   :  { %v517_v6 = vmul.f32 %v501_v55, %v481_v59  ;;  %v653_v15 = vmul.f32 %v637_v63, %v617_v10  ;;  %v684_v40 = vsel %vm1149_vm4, %v668_v20, 0.0 }
  0x94   :  { %v1085_v25 = vpop.permute.xlu1 %184  ;;  %v1087_v26 = vpop.permute.xlu0 %117 }
  0x95   :  { %v482_v11 = vsub.f32 %v1087_v26, %v1096_v27  ;;  %v618_v21 = vsub.f32 %v1085_v25, %v1109_v36  ;;  %v533_v26 = vmin.f32 %v517_v6, 0.0  ;;  %v391_v25 = vadd.s32 %v1099_v29, %v374_v14 }
  0x96   :  { %v669_v41 = vmin.f32 %v653_v15, 0.0 }
  0x97   :  { %v549_v45 = vsel %vm1171_vm6, %v533_v26, 0.0  ;;  %vm412_vm9 = vcmp.lt.s32.totalorder %v391_v25, 8 }
  0x98   :  { %v1105_v33 = vpop.permute.xlu1 %318  ;;  %v252_v34 = vpop.permute.xlu0 %251  ;;  %v685_v56 = vsel %vm1171_vm6, %v669_v41, 0.0  ;;  %vm1207_vm10 = vmand %vm412_vm9, %vm424_vm1 }
  0x99   :  { %v502_v8 = vsub.f32 %v252_v34, %v1083_v24  ;;  %v638_v12 = vsub.f32 %v1105_v33, %v1103_v32 }
  0x9b   :  { %v518_v22 = vmul.f32 %v502_v8, %v482_v11  ;;  %v654_v31 = vmul.f32 %v638_v12, %v618_v21 }
  0x9c   :  { %v1118_v43 = vpop.permute.xlu1 %188  ;;  %v122_v44 = vpop.permute.xlu0 %121 }
  0x9d   :  { %v483_v33 = vsub.f32 %v122_v44, %v1096_v27  ;;  %v534_v44 = vmin.f32 %v518_v22, 0.0  ;;  %v619_v46 = vsub.f32 %v1118_v43, %v1109_v36  ;;  %v670_v50 = vmin.f32 %v654_v31, 0.0 }
  0x9f   :  { %v550_v58 = vsel %vm1191_vm8, %v534_v44, 0.0  ;;  %v686_v63 = vsel %vm1191_vm8, %v670_v50, 0.0  ;;  %v382_v44 = vadd.s32 96, %v966_v1 }
  0xa0   :  { %v1126_v52 = vpop.permute.xlu1 %322  ;;  %v256_v53 = vpop.permute.xlu0 %255 }
  0xa1   :  { %v503_v23 = vsub.f32 %v256_v53, %v1083_v24  ;;  %v639_v34 = vsub.f32 %v1126_v52, %v1103_v32 }
  0xa3   :  { %v519_v42 = vmul.f32 %v503_v23, %v483_v33  ;;  %v655_v52 = vmul.f32 %v639_v34, %v619_v46 }
  0xa4   :  { %v1142_v0 = vpop.permute.xlu1 %192  ;;  %v126_v2 = vpop.permute.xlu0 %125 }
  0xa5   :  { %563 = vadd.xlane.f32.xlu0 %v547_v3  ;;  %v484_v47 = vsub.f32 %v126_v2, %v1096_v27  ;;  %v535_v59 = vmin.f32 %v519_v42, 0.0  ;;  %v620_v60 = vsub.f32 %v1142_v0, %v1109_v36  ;;  %v393_v2 = vadd.s32 %v1099_v29, %v376_v51 }
  0xa6   :  { %v377_v3 = vadd.s32 56, %v966_v1  ;;  %v671_v9 = vmin.f32 %v655_v52, 0.0  ;;  %v379_v51 = vadd.s32 72, %v966_v1 }
  0xa7   :  { %v551_v12 = vsel %vm1207_vm10, %v535_v59, 0.0  ;;  %vm414_vm13 = vcmp.lt.s32.totalorder %v393_v2, 8 }
  0xa8   :  { %v327_v16 = vpop.permute.xlu1 %326  ;;  %v260_v17 = vpop.permute.xlu0 %259  ;;  %v394_v15 = vadd.s32 %v1099_v29, %v377_v3  ;;  %v687_v20 = vsel %vm1207_vm10, %v671_v9, 0.0  ;;  %vm1239_vm14 = vmand %vm414_vm13, %vm424_vm1 }
  0xa9   :  { %699 = vadd.xlane.f32.xlu0 %v683_v19  ;;  %v504_v35 = vsub.f32 %v260_v17, %v1083_v24  ;;  %v640_v53 = vsub.f32 %v327_v16, %v1103_v32  ;;  %v378_v16 = vadd.s32 64, %v966_v1 }
  0xaa   :  { %565 = vadd.xlane.f32.xlu1 %v548_v18  ;;  %vm415_vm15 = vcmp.lt.s32.totalorder %v394_v15, 8 }
  0xab   :  { %v520_v43 = vmul.f32 %v504_v35, %v484_v47  ;;  %v656_v5 = vmul.f32 %v640_v53, %v620_v60  ;;  %v395_v34 = vadd.s32 %v1099_v29, %v378_v16  ;;  %vm1250_vm0 = vmand %vm415_vm15, %vm424_vm1  ;;  %v396_v60 = vadd.s32 %v1099_v29, %v379_v51 }
  0xac   :  { %v197_v37 = vpop.permute.xlu1 %196  ;;  %v130_v38 = vpop.permute.xlu0 %129 }
  0xad   :  { %701 = vadd.xlane.f32.xlu0 %v684_v40  ;;  %v485_v62 = vsub.f32 %v130_v38, %v1096_v27  ;;  %v536_v10 = vmin.f32 %v520_v43, 0.0  ;;  %v621_v14 = vsub.f32 %v197_v37, %v1109_v36  ;;  %v672_v22 = vmin.f32 %v656_v5, 0.0 }
  0xae   :  { %567 = vadd.xlane.f32.xlu1 %v549_v45  ;;  %vm416_vm2 = vcmp.lt.s32.totalorder %v395_v34, 8  ;;  %vm417_vm4 = vcmp.lt.s32.totalorder %v396_v60, 8  ;;  %v383_v60 = vadd.s32 104, %v966_v1 }
  0xaf   :  { %v552_v21 = vsel %vm1221_vm12, %v536_v10, 0.0  ;;  %v688_v40 = vsel %vm1221_vm12, %v672_v22, 0.0  ;;  %vm467_vm3 = vmand %vm416_vm2, %vm424_vm1  ;;  %v381_v22 = vadd.s32 88, %v966_v1 }
  0xb0   :  { %v331_v54 = vpop.permute.xlu1 %330  ;;  %v264_v55 = vpop.permute.xlu0 %263  ;;  %vm468_vm5 = vmand %vm417_vm4, %vm424_vm1  ;;  %vm791_vm4 = vcmask 0  }
  0xb1   :  { %v505_v57 = vsub.f32 %v264_v55, %v1083_v24  ;;  %703 = vadd.xlane.f32.xlu0 %v685_v56  ;;  %v641_v0 = vsub.f32 %v331_v54, %v1103_v32 }
  0xb2   :  { %569 = vadd.xlane.f32.xlu1 %v550_v58 }
  0xb3   :  { %v521_v11 = vmul.f32 %v505_v57, %v485_v62  ;;  %v657_v17 = vmul.f32 %v641_v0, %v621_v14  ;;  %v380_v0 = vadd.s32 80, %v966_v1 }
  0xb4   :  { %v201_v6 = vpop.permute.xlu1 %200  ;;  %v134_v8 = vpop.permute.xlu0 %133 }
  0xb5   :  { %705 = vadd.xlane.f32.xlu0 %v686_v63  ;;  %v486_v23 = vsub.f32 %v134_v8, %v1096_v27  ;;  %v537_v30 = vmin.f32 %v521_v11, 0.0  ;;  %v622_v31 = vsub.f32 %v201_v6, %v1109_v36  ;;  %v673_v41 = vmin.f32 %v657_v17, 0.0 }
  0xb6   :  { %571 = vadd.xlane.f32.xlu1 %v551_v12  ;;  %v397_v15 = vadd.s32 %v1099_v29, %v380_v0 }
  0xb7   :  { %v553_v42 = vsel %vm1239_vm14, %v537_v30, 0.0  ;;  %v689_v49 = vsel %vm1239_vm14, %v673_v41, 0.0 }
  0xb8   :  { %v335_v19 = vpop.permute.xlu1 %334  ;;  %v268_v18 = vpop.permute.xlu0 %267  ;;  %vm418_vm6 = vcmp.lt.s32.totalorder %v397_v15, 8  ;;  %v384_v15 = vadd.s32 112, %v966_v1 }
  0xb9   :  { %v642_v26 = vsub.f32 %v335_v19, %v1103_v32  ;;  %v506_v28 = vsub.f32 %v268_v18, %v1083_v24  ;;  %707 = vadd.xlane.f32.xlu0 %v687_v20  ;;  %vm469_vm7 = vmand %vm418_vm6, %vm424_vm1 }
  0xba   :  { %573 = vadd.xlane.f32.xlu1 %v552_v21 }
  0xbb   :  { %v522_v25 = vmul.f32 %v506_v28, %v486_v23  ;;  %v658_v35 = vmul.f32 %v642_v26, %v622_v31 }
  0xbc   :  { %v205_v37 = vpop.permute.xlu1 %204  ;;  %v138_v38 = vpop.permute.xlu0 %137 }
  0xbd   :  { %709 = vadd.xlane.f32.xlu0 %v688_v40  ;;  %v538_v45 = vmin.f32 %v522_v25, 0.0  ;;  %v623_v46 = vsub.f32 %v205_v37, %v1109_v36  ;;  %v674_v50 = vmin.f32 %v658_v35, 0.0  ;;  %v487_v52 = vsub.f32 %v138_v38, %v1096_v27 }
  0xbe   :  { %575 = vadd.xlane.f32.xlu1 %v553_v42  ;;  %v398_v35 = vadd.s32 %v1099_v29, %v381_v22 }
  0xbf   :  { %v554_v54 = vsel %vm1250_vm0, %v538_v45, 0.0  ;;  %v690_v59 = vsel %vm1250_vm0, %v674_v50, 0.0 }
  0xc0   :  { %v339_v47 = vpop.permute.xlu1 %338  ;;  %v272_v48 = vpop.permute.xlu0 %271  ;;  %vm419_vm8 = vcmp.lt.s32.totalorder %v398_v35, 8  ;;  %v385_v35 = vadd.s32 120, %v966_v1 }
  0xc1   :  { %v643_v53 = vsub.f32 %v339_v47, %v1103_v32  ;;  %v507_v43 = vsub.f32 %v272_v48, %v1083_v24  ;;  %711 = vadd.xlane.f32.xlu0 %v689_v49  ;;  %vm470_vm9 = vmand %vm419_vm8, %vm424_vm1 }
  0xc2   :  { %577 = vadd.xlane.f32.xlu1 %v554_v54 }
  0xc3   :  { %v659_v55 = vmul.f32 %v643_v53, %v623_v46  ;;  %v523_v56 = vmul.f32 %v507_v43, %v487_v52  ;;  %v399_v43 = vadd.s32 %v1099_v29, %v382_v44 }
  0xc4   :  { %v209_v57 = vpop.permute.xlu1 %208  ;;  %v142_v58 = vpop.permute.xlu0 %141 }
  0xc5   :  { %713 = vadd.xlane.f32.xlu0 %v690_v59  ;;  %v539_v61 = vmin.f32 %v523_v56, 0.0  ;;  %v675_v62 = vmin.f32 %v659_v55, 0.0  ;;  %v624_v6 = vsub.f32 %v209_v57, %v1109_v36  ;;  %v488_v8 = vsub.f32 %v142_v58, %v1096_v27 }
  0xc6   :  { %vm420_vm10 = vcmp.lt.s32.totalorder %v399_v43, 8 }
  0xc7   :  { %v555_v63 = vsel %vm467_vm3, %v539_v61, 0.0  ;;  %v691_v2 = vsel %vm467_vm3, %v675_v62, 0.0  ;;  %vm471_vm11 = vmand %vm420_vm10, %vm424_vm1  ;;  %vm795_vm3 = vcmask 1041408  }
  0xc8   :  { %v343_v3 = vpop.permute.xlu1 %342  ;;  %579 = vadd.xlane.f32.xlu1 %v555_v63  ;;  %v276_v5 = vpop.permute.xlu0 %275 }
  0xc9   :  { %v644_v9 = vsub.f32 %v343_v3, %v1103_v32  ;;  %v508_v10 = vsub.f32 %v276_v5, %v1083_v24  ;;  %715 = vadd.xlane.f32.xlu0 %v691_v2 }
  0xcb   :  { %v660_v11 = vmul.f32 %v644_v9, %v624_v6  ;;  %v524_v12 = vmul.f32 %v508_v10, %v488_v8  ;;  %v400_v8 = vadd.s32 %v1099_v29, %v383_v60 }
  0xcc   :  { %v213_v13 = vpop.permute.xlu1 %212  ;;  %v146_v14 = vpop.permute.xlu0 %145 }
  0xcd   :  { %v676_v16 = vmin.f32 %v660_v11, 0.0  ;;  %v540_v17 = vmin.f32 %v524_v12, 0.0  ;;  %v625_v23 = vsub.f32 %v213_v13, %v1109_v36  ;;  %v489_v26 = vsub.f32 %v146_v14, %v1096_v27 }
  0xce   :  { %vm421_vm12 = vcmp.lt.s32.totalorder %v400_v8, 8 }
  0xcf   :  { %v692_v19 = vsel %vm468_vm5, %v676_v16, 0.0  ;;  %v556_v18 = vsel %vm468_vm5, %v540_v17, 0.0  ;;  %vm472_vm13 = vmand %vm421_vm12, %vm424_vm1 }
  0xd0   :  { %v347_v20 = vpop.permute.xlu1 %346  ;;  %717 = vadd.xlane.f32.xlu0 %v692_v19  ;;  %581 = vadd.xlane.f32.xlu1 %v556_v18  ;;  %v280_v21 = vpop.permute.xlu0 %279 }
  0xd1   :  { %v645_v28 = vsub.f32 %v347_v20, %v1103_v32  ;;  %v509_v30 = vsub.f32 %v280_v21, %v1083_v24 }
  0xd3   :  { %v661_v31 = vmul.f32 %v645_v28, %v625_v23  ;;  %v525_v33 = vmul.f32 %v509_v30, %v489_v26  ;;  %v401_v26 = vadd.s32 %v1099_v29, %v384_v15 }
  0xd4   :  { %v217_v25 = vpop.permute.xlu1 %216  ;;  %v150_v34 = vpop.permute.xlu0 %149 }
  0xd5   :  { %v677_v37 = vmin.f32 %v661_v31, 0.0  ;;  %v541_v38 = vmin.f32 %v525_v33, 0.0  ;;  %v626_v46 = vsub.f32 %v217_v25, %v1109_v36  ;;  %v490_v47 = vsub.f32 %v150_v34, %v1096_v27 }
  0xd6   :  { %vm422_vm14 = vcmp.lt.s32.totalorder %v401_v26, 8 }
  0xd7   :  { %v693_v40 = vsel %vm469_vm7, %v677_v37, 0.0  ;;  %v557_v41 = vsel %vm469_vm7, %v541_v38, 0.0  ;;  %vm473_vm15 = vmand %vm422_vm14, %vm424_vm1 }
  0xd8   :  { %v351_v42 = vpop.permute.xlu1 %350  ;;  %719 = vadd.xlane.f32.xlu0 %v693_v40  ;;  %583 = vadd.xlane.f32.xlu1 %v557_v41  ;;  %v284_v45 = vpop.permute.xlu0 %283 }
  0xd9   :  { %v646_v48 = vsub.f32 %v351_v42, %v1103_v32  ;;  %v510_v49 = vsub.f32 %v284_v45, %v1083_v24 }
  0xdb   :  { %v662_v50 = vmul.f32 %v646_v48, %v626_v46  ;;  %v526_v51 = vmul.f32 %v510_v49, %v490_v47  ;;  %v402_v47 = vadd.s32 %v1099_v29, %v385_v35 }
  0xdc   :  { %v221_v52 = vpop.permute.xlu1 %220  ;;  %v154_v53 = vpop.permute.xlu0 %153 }
  0xdd   :  { %v678_v54 = vmin.f32 %v662_v50, 0.0  ;;  %v542_v55 = vmin.f32 %v526_v51, 0.0  ;;  %v627_v61 = vsub.f32 %v221_v52, %v1109_v36  ;;  %v491_v62 = vsub.f32 %v154_v53, %v1096_v27 }
  0xde   :  { %vm423_vm0 = vcmp.lt.s32.totalorder %v402_v47, 8 }
  0xdf   :  { %v694_v56 = vsel %vm470_vm9, %v678_v54, 0.0  ;;  %v558_v57 = vsel %vm470_vm9, %v542_v55, 0.0  ;;  %vm474_vm2 = vmand %vm423_vm0, %vm424_vm1  ;;  %vm748_vm1 = vcmask 7168  }
  0xe0   :  { %v355_v58 = vpop.permute.xlu1 %354  ;;  %721 = vadd.xlane.f32.xlu0 %v694_v56  ;;  %585 = vadd.xlane.f32.xlu1 %v558_v57  ;;  %v288_v59 = vpop.permute.xlu0 %287 }
  0xe1   :  { %v647_v63 = vsub.f32 %v355_v58, %v1103_v32  ;;  %v511_v2 = vsub.f32 %v288_v59, %v1083_v24 }
  0xe3   :  { %v663_v3 = vmul.f32 %v647_v63, %v627_v61  ;;  %v527_v5 = vmul.f32 %v511_v2, %v491_v62 }
  0xe4   :  { %v225_v0 = vpop.permute.xlu1 %224  ;;  %v158_v6 = vpop.permute.xlu0 %157 }
  0xe5   :  { %v679_v9 = vmin.f32 %v663_v3, 0.0  ;;  %v543_v10 = vmin.f32 %v527_v5, 0.0  ;;  %v628_v16 = vsub.f32 %v225_v0, %v1109_v36  ;;  %v492_v17 = vsub.f32 %v158_v6, %v1096_v27 }
  0xe7   :  { %v695_v11 = vsel %vm471_vm11, %v679_v9, 0.0  ;;  %v559_v12 = vsel %vm471_vm11, %v543_v10, 0.0 }
  0xe8   :  { %v359_v13 = vpop.permute.xlu1 %358  ;;  %723 = vadd.xlane.f32.xlu0 %v695_v11  ;;  %587 = vadd.xlane.f32.xlu1 %v559_v12  ;;  %v292_v14 = vpop.permute.xlu0 %291 }
  0xe9   :  { %v648_v19 = vsub.f32 %v359_v13, %v1103_v32  ;;  %v512_v18 = vsub.f32 %v292_v14, %v1083_v24 }
  0xeb   :  { %v664_v20 = vmul.f32 %v648_v19, %v628_v16  ;;  %v528_v21 = vmul.f32 %v512_v18, %v492_v17 }
  0xec   :  { %v229_v22 = vpop.permute.xlu1 %228  ;;  %v162_v23 = vpop.permute.xlu0 %161 }
  0xed   :  { %v680_v28 = vmin.f32 %v664_v20, 0.0  ;;  %v544_v30 = vmin.f32 %v528_v21, 0.0  ;;  %v629_v37 = vsub.f32 %v229_v22, %v1109_v36  ;;  %v493_v38 = vsub.f32 %v162_v23, %v1096_v27 }
  0xef   :  { %v696_v31 = vsel %vm472_vm13, %v680_v28, 0.0  ;;  %v560_v33 = vsel %vm472_vm13, %v544_v30, 0.0 }
  0xf0   :  { %v363_v25 = vpop.permute.xlu1 %362  ;;  %725 = vadd.xlane.f32.xlu0 %v696_v31  ;;  %589 = vadd.xlane.f32.xlu1 %v560_v33  ;;  %v296_v34 = vpop.permute.xlu0 %295 }
  0xf1   :  { %v649_v40 = vsub.f32 %v363_v25, %v1103_v32  ;;  %v513_v41 = vsub.f32 %v296_v34, %v1083_v24 }
  0xf3   :  { %v665_v42 = vmul.f32 %v649_v40, %v629_v37  ;;  %v529_v45 = vmul.f32 %v513_v41, %v493_v38 }
  0xf4   :  { %v233_v44 = vpop.permute.xlu1 %232  ;;  %v166_v46 = vpop.permute.xlu0 %165 }
  0xf5   :  { %v681_v48 = vmin.f32 %v665_v42, 0.0  ;;  %v545_v49 = vmin.f32 %v529_v45, 0.0  ;;  %v630_v53 = vsub.f32 %v233_v44, %v1109_v36  ;;  %v494_v43 = vsub.f32 %v166_v46, %v1096_v27 }
  0xf6   :  { %v793_v36 = vsub.f32 %v977_v4, %v992_v7 }
  0xf7   :  { %v697_v1 = vsel %vm473_vm15, %v681_v48, 0.0  ;;  %v561_v50 = vsel %vm473_vm15, %v545_v49, 0.0 }
  0xf8   :  { %v367_v51 = vpop.permute.xlu1 %366  ;;  %727 = vadd.xlane.f32.xlu0 %v697_v1  ;;  %591 = vadd.xlane.f32.xlu1 %v561_v50  ;;  %v300_v52 = vpop.permute.xlu0 %299  ;;  %v794_v27 = vmul.f32 %v793_v36, %v793_v36 }
  0xf9   :  { %v650_v54 = vsub.f32 %v367_v51, %v1103_v32  ;;  %v514_v55 = vsub.f32 %v300_v52, %v1083_v24 }
  0xfa   :  { %v796_v61 = vsel %vm795_vm3, %v794_v27, 0.0 }
  0xfb   :  { %v666_v56 = vmul.f32 %v650_v54, %v630_v53  ;;  %v530_v57 = vmul.f32 %v514_v55, %v494_v43 }
  0xfd   :  { %v682_v29 = vmin.f32 %v666_v56, 0.0  ;;  %v546_v58 = vmin.f32 %v530_v57, 0.0 }
  0xff   :  { %v698_v59 = vsel %vm474_vm2, %v682_v29, 0.0  ;;  %v562_v60 = vsel %vm474_vm2, %v546_v58, 0.0 }
 0x100   :  { %729 = vadd.xlane.f32.xlu0 %v698_v59  ;;  %593 = vadd.xlane.f32.xlu1 %v562_v60 }
 0x104   :  { %797 = vadd.xlane.f32.xlu0 %v796_v61 }
 0x12e   :  { %v564_v32 = vpop.xlane.xlu0 %563 }
 0x132   :  { %v700_v24 = vpop.xlane.xlu0 %699 }
 0x133   :  { %v566_v63 = vpop.xlane.xlu1 %565  ;;  %v731_v15 = vadd.f32 %v700_v24, %v564_v32 }
 0x135   :  { %v749_v21 = vsel %vm748_vm1, %v731_v15, 0.0 }
 0x136   :  { %v702_v62 = vpop.xlane.xlu0 %701 }
 0x137   :  { %v568_v39 = vpop.xlane.xlu1 %567  ;;  %v732_v14 = vadd.f32 %v702_v62, %v566_v63 }
 0x139   :  { %v750_v18 = vsel %vm748_vm1, %v732_v14, 0.0 }
 0x13a   :  { %v704_v2 = vpop.xlane.xlu0 %703  ;;  %v751_v26 = vadd.f32 %v750_v18, %v749_v21 }
 0x13b   :  { %v570_v5 = vpop.xlane.xlu1 %569  ;;  %v733_v16 = vadd.f32 %v704_v2, %v568_v39 }
 0x13d   :  { %v752_v22 = vsel %vm748_vm1, %v733_v16, 0.0 }
 0x13e   :  { %v706_v3 = vpop.xlane.xlu0 %705  ;;  %v753_v25 = vadd.f32 %v752_v22, %v751_v26 }
 0x13f   :  { %v572_v6 = vpop.xlane.xlu1 %571  ;;  %v734_v20 = vadd.f32 %v706_v3, %v570_v5 }
 0x141   :  { %v754_v31 = vsel %vm748_vm1, %v734_v20, 0.0 }
 0x142   :  { %v708_v0 = vpop.xlane.xlu0 %707  ;;  %v755_v37 = vadd.f32 %v754_v31, %v753_v25 }
 0x143   :  { %v574_v9 = vpop.xlane.xlu1 %573  ;;  %v735_v23 = vadd.f32 %v708_v0, %v572_v6 }
 0x145   :  { %v756_v34 = vsel %vm748_vm1, %v735_v23, 0.0 }
 0x146   :  { %v710_v8 = vpop.xlane.xlu0 %709  ;;  %v757_v45 = vadd.f32 %v756_v34, %v755_v37 }
 0x147   :  { %v576_v11 = vpop.xlane.xlu1 %575  ;;  %v736_v33 = vadd.f32 %v710_v8, %v574_v9 }
 0x149   :  { %v758_v41 = vsel %vm748_vm1, %v736_v33, 0.0 }
 0x14a   :  { %v712_v10 = vpop.xlane.xlu0 %711  ;;  %v759_v47 = vadd.f32 %v758_v41, %v757_v45 }
 0x14b   :  { %v578_v4 = vpop.xlane.xlu1 %577  ;;  %v737_v35 = vadd.f32 %v712_v10, %v576_v11 }
 0x14d   :  { %v760_v44 = vsel %vm748_vm1, %v737_v35, 0.0 }
 0x14e   :  { %v714_v12 = vpop.xlane.xlu0 %713  ;;  %v761_v51 = vadd.f32 %v760_v44, %v759_v47 }
 0x14f   :  { %v738_v42 = vadd.f32 %v714_v12, %v578_v4 }
 0x151   :  { %v580_v7 = vpop.xlane.xlu1 %579  ;;  %v762_v1 = vsel %vm748_vm1, %v738_v42, 0.0 }
 0x152   :  { %v716_v13 = vpop.xlane.xlu0 %715  ;;  %v763_v43 = vadd.f32 %v762_v1, %v761_v51 }
 0x153   :  { %v739_v46 = vadd.f32 %v716_v13, %v580_v7 }
 0x155   :  { %v764_v52 = vsel %vm748_vm1, %v739_v46, 0.0 }
 0x156   :  { %v765_v29 = vadd.f32 %v764_v52, %v763_v43 }
 0x159   :  { %v582_v17 = vpop.xlane.xlu1 %581  ;;  %v718_v19 = vpop.xlane.xlu0 %717 }
 0x15a   :  { %v740_v50 = vadd.f32 %v718_v19, %v582_v17 }
 0x15c   :  { %v766_v56 = vsel %vm748_vm1, %v740_v50, 0.0 }
 0x15d   :  { %v767_v60 = vadd.f32 %v766_v56, %v765_v29 }
 0x161   :  { %v584_v28 = vpop.xlane.xlu1 %583  ;;  %v720_v30 = vpop.xlane.xlu0 %719 }
 0x162   :  { %v741_v53 = vadd.f32 %v720_v30, %v584_v28 }
 0x164   :  { %v768_v58 = vsel %vm748_vm1, %v741_v53, 0.0 }
 0x165   :  { %v769_v24 = vadd.f32 %v768_v58, %v767_v60 }
 0x169   :  { %v586_v38 = vpop.xlane.xlu1 %585  ;;  %v722_v40 = vpop.xlane.xlu0 %721 }
 0x16a   :  { %v742_v57 = vadd.f32 %v722_v40, %v586_v38 }
 0x16c   :  { %v770_v61 = vsel %vm748_vm1, %v742_v57, 0.0 }
 0x16d   :  { %v771_v2 = vadd.f32 %v770_v61, %v769_v24 }
 0x171   :  { %v588_v48 = vpop.xlane.xlu1 %587  ;;  %v724_v49 = vpop.xlane.xlu0 %723 }
 0x172   :  { %v743_v59 = vadd.f32 %v724_v49, %v588_v48 }
 0x174   :  { %v772_v62 = vsel %vm748_vm1, %v743_v59, 0.0 }
 0x175   :  { %v773_v3 = vadd.f32 %v772_v62, %v771_v2 }
 0x179   :  { %v590_v54 = vpop.xlane.xlu1 %589  ;;  %v726_v55 = vpop.xlane.xlu0 %725 }
 0x17a   :  { %v744_v32 = vadd.f32 %v726_v55, %v590_v54 }
 0x17c   :  { %v774_v39 = vsel %vm748_vm1, %v744_v32, 0.0 }
 0x17d   :  { %v775_v0 = vadd.f32 %v774_v39, %v773_v3 }
 0x181   :  { %v592_v36 = vpop.xlane.xlu1 %591  ;;  %v728_v27 = vpop.xlane.xlu0 %727 }
 0x182   :  { %v745_v63 = vadd.f32 %v728_v27, %v592_v36 }
 0x184   :  { %v776_v5 = vsel %vm748_vm1, %v745_v63, 0.0 }
 0x185   :  { %v777_v10 = vadd.f32 %v776_v5, %v775_v0 }
 0x189   :  { %v594_v6 = vpop.xlane.xlu1 %593  ;;  %v730_v8 = vpop.xlane.xlu0 %729 }
 0x18a   :  { %v746_v9 = vadd.f32 %v730_v8, %v594_v6 }
 0x18c   :  { %v778_v11 = vsel %vm748_vm1, %v746_v9, 0.0 }
 0x18d   :  { %v779_v12 = vadd.f32 %v778_v11, %v777_v10  ;;  %v798_v4 = vpop.xlane.xlu0 %797 }
 0x18e   :  { %v799_v7 = vrot.slane %v798_v4, 4 }
 0x18f   :  { %780 = vadd.xlane.f32.xlu1 %v779_v12 }
 0x190   :  { %v800_v13 = vadd.f32 %v799_v7, %v798_v4 }
 0x192   :  { %v801_v14 = vrot.slane %v800_v13, 2 }
 0x194   :  { %v802_v19 = vadd.f32 %v801_v14, %v800_v13 }
 0x196   :  { %v803_v21 = vrot.slane %v802_v19, 1 }
 0x198   :  { %v804_v26 = vadd.f32 %v803_v21, %v802_v19 }
 0x218   :  { %v781_v15 = vpop.xlane.xlu1 %780 }
 0x219   :  { %v782_v16 = vrot.slane %v781_v15, 4 }
 0x21b   :  { %v783_v17 = vadd.f32 %v782_v16, %v781_v15 }
 0x21d   :  { %v784_v18 = vrot.slane %v783_v17, 2 }
 0x21f   :  { %v785_v20 = vadd.f32 %v784_v18, %v783_v17 }
 0x221   :  { %v786_v22 = vrot.slane %v785_v20, 1 }
 0x223   :  { %v787_v23 = vadd.f32 %v786_v22, %v785_v20 }
 0x225   :  { %867 = vpush %v787_v23 }
 0x226   :  { %869 = vpush %v804_v26 }
 0x256   :  { %s868_s2 = spop %867 }
 0x257   :  { %s789_s3 = smul.f32 %s868_s2, %s747_s8  ;;  %s870_s13 = spop %869 }
 0x258   :  { %s1378_s13 = smov (!%p95_p2, %s870_s13), 0.0 }
 0x259   :  { %v790_v28 = vstv %s789_s3  ;;  %v807_v30 = vstv %s1378_s13 }
 0x25a   :  { %792 = vst.msk [vmem:[#allocation7] sm:$0x1] %vm791_vm4, %v790_v28  ;;  %808 = vst.msk [vmem:[#allocation5] sm:$0x1] %vm791_vm4, %v807_v30 }
 0x25b   :  { %884 = shalt.err (!%p881_p7)
}
 0x25c   :  { %828 = dma.vmem_to_hbm [thread:$0]  %s826_s10, 16, %s1360_s7, [#allocation8]  }
 0x25d   :  { %s893_s16 = scalar_lea.vmem %s816_s12, 16  ;;  %s897_s17 = scalar_lea.vmem %s816_s12, 32 }
 0x25e   :  { %p894_p8 = scmp.ne.s32.totalorder %s816_s12, %s893_s16  ;;  %p898_p9 = scmp.lt.s32.totalorder %s816_s12, %s816_s12 }
 0x25f   :  { %p899_p10 = scmp.lt.s32.totalorder %s897_s17, %s893_s16 }
 0x261   :  { %p900_p11 = por %p899_p10, %p898_p9 }
 0x263   :  { %p901_p12 = pnand %p900_p11, %p894_p8 }
 0x265   :  { %904 = shalt.err (!%p901_p12)
}
 0x266   :  { %818 = dma.vmem_to_hbm [thread:$0]  %s816_s12, 16, %s1359_s6, [#allocation6]  }
 0x267   :  { %913 = dma.done.wait [#allocation6], 16  }
 0x268   :  { %914 = vsyncadd [#allocation6], 4294967280 }
 0x269   :  { %915 = dma.done.wait [#allocation8], 16  }
 0x26a   :  { %916 = vsyncadd [#allocation8], 4294967280 }
 0x26b   :  { %835 = vsyncpa [#allocation6], 1 }
 0x26c   :  { %836 = vsyncpa [#allocation8], 1 }

</bundles_post_ra>
